<compile_context>
chip_gen: v7x
topology: tpu7x:2x2x1
jax: 0.10.0
libtpu: 0.0.40
codegen_flags: <defaults>
</compile_context>

<pallas_src>
import jax
import jax.numpy as jnp
from jax.experimental import pallas as pl
from jax.experimental.pallas import tpu as pltpu

_LANE = 128


# -----------------------------------------------------------------------------
# Kernels
# -----------------------------------------------------------------------------
def sa_fused_kernel(x_ref, wq_ref, bq_ref, wv_ref, bv_ref, o_ref):
    """Single-pass path: whole per-batch [C, HW] slab is VMEM-resident."""
    x = x_ref[0]                                               # [C, HW], input dtype
    hw = x.shape[-1]

    # GAP folded through wq:  mean_HW(wq@x + bq) == wq @ mean_HW(x) + bq
    x_mean = jnp.sum(x.astype(jnp.float32), axis=-1, keepdims=True) * (1.0 / hw)  # [C,1]
    q_pool = jnp.dot(wq_ref[...], x_mean,
                     preferred_element_type=jnp.float32) + bq_ref[...]            # [C/2,1]

    # softmax over the pooled C/2 channels (f32 for stability)
    q_max = jnp.max(q_pool, axis=0, keepdims=True)
    q_exp = jnp.exp(q_pool - q_max)
    q_sm = q_exp / jnp.sum(q_exp, axis=0, keepdims=True)                          # [C/2,1]

    # softmax folded into wv: q^T@(wv@x + bv) == (q^T@wv)@x + q^T@bv
    w_eff = jnp.sum(q_sm * wv_ref[...], axis=0, keepdims=True)                    # [1, C]
    b_eff = jnp.sum(q_sm * bv_ref[...])                                           # scalar

    attn = jnp.dot(w_eff.astype(x.dtype), x,
                   preferred_element_type=jnp.float32) + b_eff                    # [1, HW]
    gate = jax.nn.sigmoid(attn).astype(x.dtype)
    o_ref[0] = (x * gate).astype(o_ref.dtype)


def sa_stream_kernel(w_ref, b_ref, x_ref, o_ref):
    """Streaming path: per-batch gate weights precomputed in the wrapper.

    Pure stream: read x tile (native dtype), one skinny dot, sigmoid, multiply,
    write back in native dtype. No full-tile f32 intermediate.
    """
    x = x_ref[0]                                               # [C, TILE], input dtype
    w = w_ref[0].astype(x.dtype)                               # [1, C]
    b = b_ref[pl.program_id(0), 0]                             # f32 scalar from SMEM

    attn = jnp.dot(w, x, preferred_element_type=jnp.float32) + b                  # [1, TILE]
    gate = jax.nn.sigmoid(attn).astype(x.dtype)
    o_ref[0] = (x * gate).astype(o_ref.dtype)


# -----------------------------------------------------------------------------
# Wrapper
# -----------------------------------------------------------------------------
def _choose_tile(C, HW, itemsize, tile_budget_bytes):
    """Largest multiple-of-128 HW tile s.t. double-buffered in+out tiles fit budget."""
    max_tile = max(_LANE, (tile_budget_bytes // (4 * C * itemsize)) // _LANE * _LANE)
    hw_lane = pl.cdiv(HW, _LANE) * _LANE
    tile = min(max_tile, hw_lane)
    if tile >= HW:
        # Use the exact spatial extent as a single block (equal-to-full-dim is
        # always a legal block shape, no 128-divisibility needed).
        tile = HW
    return tile


def sa_forward(x, wq, bq, wv, bv, *,
               tile_budget_bytes=12 * 1024 * 1024,
               fast_path_budget_bytes=20 * 1024 * 1024,
               vmem_limit_bytes=48 * 1024 * 1024,
               tile=None):
    B, C, H, W = x.shape
    HW = H * W
    Ch = wq.shape[0]
    itemsize = x.dtype.itemsize
    x2 = x.reshape(B, C, HW)

    wq_f = wq.astype(jnp.float32)
    wv_f = wv.astype(jnp.float32)
    bq_f = bq.astype(jnp.float32)
    bv_f = bv.astype(jnp.float32)

    # Double-buffered footprint of the single-pass path: (in + out) slab + weights.
    fast_bytes = 4 * C * HW * itemsize + 2 * 2 * (Ch * C + Ch) * 4

    if tile is None and fast_bytes <= fast_path_budget_bytes:
        # ---- Fast path: one kernel invocation per batch, mean computed in-kernel.
        out = pl.pallas_call(
            sa_fused_kernel,
            out_shape=jax.ShapeDtypeStruct((B, C, HW), x.dtype),
            grid_spec=pltpu.PrefetchScalarGridSpec(
                num_scalar_prefetch=0,
                grid=(B,),
                in_specs=[
                    pl.BlockSpec((1, C, HW), lambda b: (b, 0, 0)),   # x slab
                    pl.BlockSpec((Ch, C), lambda b: (0, 0)),         # wq
                    pl.BlockSpec((Ch, 1), lambda b: (0, 0)),         # bq
                    pl.BlockSpec((Ch, C), lambda b: (0, 0)),         # wv
                    pl.BlockSpec((Ch, 1), lambda b: (0, 0)),         # bv
                ],
                out_specs=pl.BlockSpec((1, C, HW), lambda b: (b, 0, 0)),
            ),
            compiler_params=pltpu.CompilerParams(
                dimension_semantics=("parallel",),
                vmem_limit_bytes=vmem_limit_bytes,
            ),
        )(x2, wq_f, bq_f.reshape(Ch, 1), wv_f, bv_f.reshape(Ch, 1))
        return out.reshape(B, C, H, W)

    # ---- Streaming path: hoist the tiny per-batch gate math into the wrapper.
    # (One extra read of x for the mean; accumulate in f32 without materializing
    # an f32 copy.)
    x_mean = jnp.mean(x2, axis=-1, dtype=jnp.float32)                  # [B, C]
    q_pool = x_mean @ wq_f.T + bq_f[None, :]                           # [B, C/2]
    q_sm = jax.nn.softmax(q_pool, axis=-1)                             # [B, C/2]
    w_eff = (q_sm @ wv_f).reshape(B, 1, C)                             # [B, 1, C] lane-dense
    b_eff = q_sm @ bv_f.reshape(Ch, 1)                                 # [B, 1]

    if tile is None:
        tile = _choose_tile(C, HW, itemsize, tile_budget_bytes)
    n_tiles = pl.cdiv(HW, tile)   # no padding: Pallas masks the partial edge tile

    out = pl.pallas_call(
        sa_stream_kernel,
        out_shape=jax.ShapeDtypeStruct((B, C, HW), x.dtype),
        grid_spec=pltpu.PrefetchScalarGridSpec(
            num_scalar_prefetch=0,
            grid=(B, n_tiles),
            in_specs=[
                pl.BlockSpec((1, 1, C), lambda b, t: (b, 0, 0)),       # w_eff
                pl.BlockSpec(memory_space=pltpu.MemorySpace.SMEM),     # b_eff (tiny, SMEM)
                pl.BlockSpec((1, C, tile), lambda b, t: (b, 0, t)),    # x tile
            ],
            out_specs=pl.BlockSpec((1, C, tile), lambda b, t: (b, 0, t)),
        ),
        compiler_params=pltpu.CompilerParams(
            dimension_semantics=("parallel", "parallel"),
            vmem_limit_bytes=vmem_limit_bytes,
        ),
    )(w_eff, b_eff, x2)
    return out.reshape(B, C, H, W)


# -----------------------------------------------------------------------------
# Pure-JAX reference (mirrors the PyTorch forward) for verification
# -----------------------------------------------------------------------------
def sa_reference(x, wq, bq, wv, bv):
    B, C, H, W = x.shape
    Ch = wq.shape[0]
    x2 = x.reshape(B, C, H * W)
    wq_out = jnp.einsum('oc,bcn->bon', wq, x2) + bq.reshape(1, Ch, 1)
    wv_out = jnp.einsum('oc,bcn->bon', wv, x2) + bv.reshape(1, Ch, 1)
    q_pool = jnp.mean(wq_out, axis=-1)                  # [B, C//2]
    q_sm = jax.nn.softmax(q_pool, axis=-1)              # [B, C//2]
    attn = jnp.einsum('bc,bcn->bn', q_sm, wv_out)       # [B, HW]
    gate = jax.nn.sigmoid(attn)[:, None, :]             # [B, 1, HW]
    return (x2 * gate).reshape(B, C, H, W)


if __name__ == "__main__":
    B, C, H, W = 2, 4, 16, 16
    Ch = C // 2

    key = jax.random.PRNGKey(0)
    k1, k2, k3, k4, k5 = jax.random.split(key, 5)
    x = jax.random.normal(k1, (B, C, H, W), dtype=jnp.float32)

    bound = 1.0 / (C ** 0.5)
    wq = jax.random.uniform(k2, (Ch, C), minval=-bound, maxval=bound, dtype=jnp.float32)
    bq = jax.random.uniform(k3, (Ch,), minval=-bound, maxval=bound, dtype=jnp.float32)
    wv = jax.random.uniform(k4, (Ch, C), minval=-bound, maxval=bound, dtype=jnp.float32)
    bv = jax.random.uniform(k5, (Ch,), minval=-bound, maxval=bound, dtype=jnp.float32)

    # --- Fast single-pass (VMEM-resident) path ---
    out_fast = sa_forward(x, wq, bq, wv, bv)
    jax.block_until_ready(out_fast)
    ref = sa_reference(x, wq, bq, wv, bv)
    assert out_fast.shape == (B, C, H, W)
    assert jnp.allclose(out_fast, ref, atol=1e-5, rtol=1e-5), "fused path mismatch vs reference"

    # --- Streaming path (forced), including a masked partial edge tile (HW=272, tile=128) ---
    H2, W2 = 16, 17
    x_big = jax.random.normal(k1, (B, C, H2, W2), dtype=jnp.float32)
    out_stream = sa_forward(x_big, wq, bq, wv, bv, fast_path_budget_bytes=0, tile=128)
    jax.block_until_ready(out_stream)
    ref2 = sa_reference(x_big, wq, bq, wv, bv)
    assert out_stream.shape == (B, C, H2, W2)
    assert jnp.allclose(out_stream, ref2, atol=1e-5, rtol=1e-5), "stream path mismatch vs reference"

    print("KERNEL_OK")
</pallas_src>

<mosaic_0001>
module attributes {stable_mosaic.version = 11 : i64} {
  func.func @sa_fused_kernel(%arg0: i32, %arg1: memref<1x4x256xf32, #tpu.memory_space<vmem>>, %arg2: memref<2x4xf32, #tpu.memory_space<vmem>>, %arg3: memref<2x1xf32, #tpu.memory_space<vmem>>, %arg4: memref<2x4xf32, #tpu.memory_space<vmem>>, %arg5: memref<2x1xf32, #tpu.memory_space<vmem>>, %arg6: memref<1x4x256xf32, #tpu.memory_space<vmem>>) attributes {dimension_semantics = [#tpu.dimension_semantics<parallel>], iteration_bounds = array<i64: 2>, scalar_prefetch = 0 : i64, scratch_operands = 0 : i64, tpu.core_type = #tpu.core_type<tc>, window_params = [{transform_indices = @transform_0, window_bounds = array<i64: 1, 4, 256>}, {pipeline_mode = #tpu.pipeline_mode<synchronous>, transform_indices = @transform_1, window_bounds = array<i64: 2, 4>}, {pipeline_mode = #tpu.pipeline_mode<synchronous>, transform_indices = @transform_2, window_bounds = array<i64: 2, 1>}, {pipeline_mode = #tpu.pipeline_mode<synchronous>, transform_indices = @transform_3, window_bounds = array<i64: 2, 4>}, {pipeline_mode = #tpu.pipeline_mode<synchronous>, transform_indices = @transform_4, window_bounds = array<i64: 2, 1>}, {transform_indices = @transform_5, window_bounds = array<i64: 1, 4, 256>}]} {
    %c0 = arith.constant 0 : index
    %c0_0 = arith.constant 0 : index
    %c0_1 = arith.constant 0 : index
    %0 = vector.load %arg1[%c0, %c0_0, %c0_1] : memref<1x4x256xf32, #tpu.memory_space<vmem>>, vector<1x4x256xf32>
    %1 = vector.shape_cast %0 : vector<1x4x256xf32> to vector<4x256xf32>
    %cst = arith.constant dense<0.000000e+00> : vector<4xf32>
    %2 = vector.multi_reduction <add>, %1, %cst [1] : vector<4x256xf32> to vector<4xf32>
    %3 = vector.shape_cast %2 : vector<4xf32> to vector<4x1xf32>
    %cst_2 = arith.constant 3.906250e-03 : f32
    %4 = vector.broadcast %cst_2 : f32 to vector<4x1xf32>
    %5 = arith.mulf %3, %4 : vector<4x1xf32>
    %c0_3 = arith.constant 0 : index
    %c0_4 = arith.constant 0 : index
    %6 = vector.load %arg2[%c0_3, %c0_4] : memref<2x4xf32, #tpu.memory_space<vmem>>, vector<2x4xf32>
    %cst_5 = arith.constant dense<0.000000e+00> : vector<2x1xf32>
    %7 = tpu.matmul %6, %5, %cst_5 {dimension_numbers = #tpu.dot_dimension_numbers<[1], [0], [0], [1], [0, 0, 1, 1], [], []>} : vector<2x4xf32>, vector<4x1xf32>, vector<2x1xf32> -> vector<2x1xf32>
    %c0_6 = arith.constant 0 : index
    %c0_7 = arith.constant 0 : index
    %8 = vector.load %arg3[%c0_6, %c0_7] : memref<2x1xf32, #tpu.memory_space<vmem>>, vector<2x1xf32>
    %9 = arith.addf %7, %8 : vector<2x1xf32>
    %cst_8 = arith.constant dense<0xFF800000> : vector<1xf32>
    %10 = vector.multi_reduction <maximumf>, %9, %cst_8 [0] : vector<2x1xf32> to vector<1xf32>
    %11 = vector.shape_cast %10 : vector<1xf32> to vector<1x1xf32>
    %12 = vector.broadcast %11 : vector<1x1xf32> to vector<2x1xf32>
    %13 = arith.subf %9, %12 : vector<2x1xf32>
    %14 = math.exp %13 : vector<2x1xf32>
    %cst_9 = arith.constant dense<0.000000e+00> : vector<1xf32>
    %15 = vector.multi_reduction <add>, %14, %cst_9 [0] : vector<2x1xf32> to vector<1xf32>
    %16 = vector.shape_cast %15 : vector<1xf32> to vector<1x1xf32>
    %17 = vector.broadcast %16 : vector<1x1xf32> to vector<2x1xf32>
    %18 = arith.divf %14, %17 : vector<2x1xf32>
    %c0_10 = arith.constant 0 : index
    %c0_11 = arith.constant 0 : index
    %19 = vector.load %arg4[%c0_10, %c0_11] : memref<2x4xf32, #tpu.memory_space<vmem>>, vector<2x4xf32>
    %20 = vector.broadcast %18 : vector<2x1xf32> to vector<2x4xf32>
    %21 = arith.mulf %20, %19 : vector<2x4xf32>
    %cst_12 = arith.constant dense<0.000000e+00> : vector<4xf32>
    %22 = vector.multi_reduction <add>, %21, %cst_12 [0] : vector<2x4xf32> to vector<4xf32>
    %23 = vector.shape_cast %22 : vector<4xf32> to vector<1x4xf32>
    %c0_13 = arith.constant 0 : index
    %c0_14 = arith.constant 0 : index
    %24 = vector.load %arg5[%c0_13, %c0_14] : memref<2x1xf32, #tpu.memory_space<vmem>>, vector<2x1xf32>
    %25 = arith.mulf %18, %24 : vector<2x1xf32>
    %26 = vector.shape_cast %25 : vector<2x1xf32> to vector<1x2x1xf32>
    %cst_15 = arith.constant dense<0.000000e+00> : vector<1xf32>
    %27 = vector.multi_reduction <add>, %26, %cst_15 [1, 2] : vector<1x2x1xf32> to vector<1xf32>
    %28 = vector.shape_cast %27 : vector<1xf32> to vector<1x1x1xf32>
    %29 = vector.extract %28[0, 0, 0] : f32 from vector<1x1x1xf32>
    %cst_16 = arith.constant dense<0.000000e+00> : vector<1x256xf32>
    %30 = tpu.matmul %23, %1, %cst_16 {dimension_numbers = #tpu.dot_dimension_numbers<[1], [0], [0], [1], [0, 0, 1, 1], [], []>} : vector<1x4xf32>, vector<4x256xf32>, vector<1x256xf32> -> vector<1x256xf32>
    %31 = vector.broadcast %29 : f32 to vector<1x256xf32>
    %32 = arith.addf %30, %31 : vector<1x256xf32>
    %33 = arith.negf %32 : vector<1x256xf32>
    %34 = math.exp %33 : vector<1x256xf32>
    %cst_17 = arith.constant 1.000000e+00 : f32
    %35 = vector.broadcast %cst_17 : f32 to vector<1x256xf32>
    %36 = arith.addf %35, %34 : vector<1x256xf32>
    %37 = arith.divf %35, %36 : vector<1x256xf32>
    %38 = vector.broadcast %37 : vector<1x256xf32> to vector<4x256xf32>
    %39 = arith.mulf %1, %38 : vector<4x256xf32>
    %c0_18 = arith.constant 0 : index
    %c0_19 = arith.constant 0 : index
    %c0_20 = arith.constant 0 : index
    %40 = vector.load %arg6[%c0_18, %c0_19, %c0_20] : memref<1x4x256xf32, #tpu.memory_space<vmem>>, vector<1x4x256xf32>
    %41 = vector.shape_cast %40 : vector<1x4x256xf32> to vector<4x256xf32>
    %42 = vector.shape_cast %39 : vector<4x256xf32> to vector<1x4x256xf32>
    tpu.vector_store %arg6[%c0_18, %c0_19, %c0_20], %42 {strides = array<i32>} : memref<1x4x256xf32, #tpu.memory_space<vmem>>, vector<1x4x256xf32>,
    return
  }
  func.func @transform_0(%arg0: i32) -> (i32, i32, i32) {
    %c0_i32 = arith.constant 0 : i32
    %c0_i32_0 = arith.constant 0 : i32
    %c0_i32_1 = arith.constant 0 : i32
    return %arg0, %c0_i32, %c0_i32_0 : i32, i32, i32
  }
  func.func @transform_1(%arg0: i32) -> (i32, i32) {
    %c0_i32 = arith.constant 0 : i32
    %c0_i32_0 = arith.constant 0 : i32
    %c0_i32_1 = arith.constant 0 : i32
    return %c0_i32, %c0_i32_0 : i32, i32
  }
  func.func @transform_2(%arg0: i32) -> (i32, i32) {
    %c0_i32 = arith.constant 0 : i32
    %c0_i32_0 = arith.constant 0 : i32
    %c0_i32_1 = arith.constant 0 : i32
    return %c0_i32, %c0_i32_0 : i32, i32
  }
  func.func @transform_3(%arg0: i32) -> (i32, i32) {
    %c0_i32 = arith.constant 0 : i32
    %c0_i32_0 = arith.constant 0 : i32
    %c0_i32_1 = arith.constant 0 : i32
    return %c0_i32, %c0_i32_0 : i32, i32
  }
  func.func @transform_4(%arg0: i32) -> (i32, i32) {
    %c0_i32 = arith.constant 0 : i32
    %c0_i32_0 = arith.constant 0 : i32
    %c0_i32_1 = arith.constant 0 : i32
    return %c0_i32, %c0_i32_0 : i32, i32
  }
  func.func @transform_5(%arg0: i32) -> (i32, i32, i32) {
    %c0_i32 = arith.constant 0 : i32
    %c0_i32_0 = arith.constant 0 : i32
    %c0_i32_1 = arith.constant 0 : i32
    return %arg0, %c0_i32, %c0_i32_0 : i32, i32, i32
  }
}

</mosaic_0001>

<bundles_post_ra>
// kernel: tpu_custom_call.1
= control target key start
LH: loop header
LB: loop body
LE: loop exit
PB: predicated region body
PF: predicated region fallthrough
CT: control target
= control target key end

     0   :  { %10 = vsyncpa [#allocation3], 0  ;;  %s990_s0 = inlined_call_operand.hbm [shape: f32[2,4,256], index: 0, kind: input, shape index: {}]   ;;  %s991_s1 = inlined_call_operand.vmem [shape: f32[2,4], index: 1, kind: input, shape index: {}]   ;;  %s992_s2 = inlined_call_operand.vmem [shape: f32[2,1], index: 2, kind: input, shape index: {}]   ;;  %s993_s3 = inlined_call_operand.vmem [shape: f32[2,4], index: 3, kind: input, shape index: {}]   ;;  %s994_s4 = inlined_call_operand.vmem [shape: f32[2,1], index: 4, kind: input, shape index: {}]   ;;  %s995_s5 = inlined_call_operand.hbm [shape: f32[2,4,256], index: 5, kind: output, shape index: {}]  }
   0x1   :  { %12 = vsyncpa [#allocation3 + $0x1], 0 }
   0x2   :  { %13 = vsyncpa [#allocation4], 0 }
   0x3   :  { %15 = vsyncpa [#allocation4 + $0x1], 0  ;;  %s796_s18 = smov 0   ;;  %s798_s19 = smov 0  }
   0x4   :  { %s800_s20 = smov 0   ;;  %s802_s21 = smov 0  }
   0x5 LB: > { %s817_s22 = sadd.s32 4294967295, %s759_s21   ;;  %s568_s23 = sadd.s32 4294967294, %s759_s21   ;;  %s759_s21 = sphi %s802_s21, %s1010_s21   ;;  %s755_s20 = sphi %s800_s20, %s1009_s20   ;;  %s751_s19 = sphi %s798_s19, %s1008_s19   ;;  %s747_s18 = sphi %s796_s18, %s1007_s18  }
   0x6   : > { %s821_s24 = sadd.s32 1, %s759_s21   ;;  %s28_s25 = sadd.s32 1, %s755_s20 }
   0x7   : > { %s25_s26 = ssub.s32 %s759_s21, %s821_s24  ;;  %p35_p0 = scmp.ne.s32.totalorder %s755_s20, %s751_s19 }
   0x8   : > { %p26_p1 = scmp.eq.s32.totalorder %s25_s26, 0  ;;  %p36_p2 = scmp.eq.s32.totalorder %s759_s21, 0 }
   0x9   : > { %p41_p3 = scmp.ne.s32.totalorder %s751_s19, %s747_s18  ;;  %p42_p4 = scmp.eq.s32.totalorder %s817_s22, 0 }
   0xa   : > { %s833_s27 = scalar_select %p26_p1, %s755_s20, %s28_s25  }
   0xb   : > { %p835_p5 = por %p36_p2, %p35_p0  ;;  %p839_p6 = por %p42_p4, %p41_p3 }
   0xc   : > { %p149_p7 = scmp.eq.s32.totalorder %s817_s22, 1  ;;  %p155_p8 = scmp.eq.s32.totalorder %s568_s23, 1 }
   0xd   : > { %p612_p10 = scmp.lt.s32.totalorder %s759_s21, 2  ;;  %s187_s7 = sand.u32 1, %s755_s20  }
   0xe   : > { %p846_p11 = por %p149_p7, %p35_p0  ;;  %p850_p12 = por %p155_p8, %p41_p3 }
   0xf   : > { %s589_s8 = sshll.u32 %s759_s21, 7  ;;  %s571_s9 = sshll.u32 %s187_s7, 3 }
  0x10   : > { %s999_s30 = scalar_select %p846_p11, 1, 0 }
  0x11   : > { %s1000_s6 = scalar_select %p850_p12, 1, 0 }
  0x12   : > { %s859_s12 = scalar_lea.hbm %s990_s0, %s589_s8  ;;  %s191_s13 = scalar_lea.vmem [#allocation2], %s571_s9 }
  0x13   : > { %s199_s14 = sshll.u32 %s191_s13, 4  ;;  %p863_p13 = pnand %p612_p10, %p835_p5  ;;  %s867_s14 = int_to_ptr.vmem [resolvable:$true] %s199_s14 }
  0x14   : > { %s188_s16 = scalar_lea.sflag [#allocation3], %s187_s7  ;;  %s663_s17 = scalar_lea.hbm %s859_s12, 128 }
  0x15   : > { %p664_p2 = scmp.ne.s32.totalorder %s859_s12, %s663_s17  ;;  %p665_p3 = pneg %p863_p13 }
  0x16   : > { %s668_s26 = scalar_lea.hbm %s990_s0, 256  ;;  %p669_p5 = scmp.lt.u32.totalorder %s859_s12, %s990_s0 }
  0x17   : > { %p666_p4 = pnand %p665_p3, %p664_p2  ;;  %p670_p8 = scmp.lt.u32.totalorder %s668_s26, %s663_s17 }
  0x18   : > { %p672_p9 = scmp.lt.u32.totalorder %s663_s17, %s859_s12 }
  0x19   : > { %p667_p7 = pneg %p666_p4  ;;  %p671_p10 = por %p670_p8, %p669_p5 }
  0x1b   : > { %p673_p0 = por %p672_p9, %p671_p10 }
  0x1d   : > { %p674_p1 = pnand %p673_p0, %p667_p7 }
  0x1f   : > { %677 = shalt.err (!%p674_p1)
}
  0x20   : > { %s678_s7 = scalar_lea.vmem %s867_s14, 128  ;;  %s761_s9 = smov [#allocation2]  }
  0x21   : > { %p679_p2 = scmp.ne.s32.totalorder %s867_s14, %s678_s7  ;;  %s683_s10 = sshll.u32 %s761_s9, 4  ;;  %s684_s10 = int_to_ptr.vmem [resolvable:$false] %s683_s10 }
  0x22   : > { %s685_s11 = scalar_lea.vmem %s684_s10, 256  ;;  %p686_p11 = scmp.lt.s32.totalorder %s867_s14, %s684_s10 }
  0x23   : > { %p681_p4 = pnand %p679_p2, %p665_p3  ;;  %p687_p5 = scmp.lt.s32.totalorder %s685_s11, %s678_s7 }
  0x25   : > { %p682_p12 = pneg %p681_p4  ;;  %p688_p8 = por %p687_p5, %p686_p11 }
  0x27   : > { %p689_p9 = pnand %p688_p8, %p682_p12 }
  0x29   : > { %692 = shalt.err (!%p689_p9)
}
  0x2a   : > { %607 = dma.hbm_to_vmem [thread:$0]  (!%p863_p13), %s859_s12, 128, %s867_s14, %s188_s16  }
  0x2b   : > { %p1002_p0 = scmp.lt.s32.totalorder %s759_s21, 3  ;;  %p1003_p1 = scmp.ge.s32.totalorder %s759_s21, 1 }
  0x2d   : > { %p205_p3 = pnand %p1003_p1, %p1002_p0 }
  0x2e   : > { %s901_s13 = sand.u32 (!%p205_p3), 1, %s751_s19  }
  0x2f   : > { %208 = sbr.rel (%p205_p3) target bundleno = 878 (0x36e), region = 40  ;;  %s575_s17 = sshll.u32 (!%p205_p3), %s901_s13, 3 }
  0x30   : > { %s211_s23 = scalar_lea.sflag (!%p205_p3), [#allocation3], %s901_s13  ;;  %s214_s15 = scalar_lea.vmem (!%p205_p3), [#allocation2], %s575_s17 }
  0x36   : > { %738 = dma.done.wait (%p839_p6), %s211_s23, 128  }
  0x37   : > { %740 = vsyncadd (%p839_p6), %s211_s23, 4294967168  ;;  %vm245_vm0 = vcmask 1043456   ;;  %v911_v0 = vld [vmem:[%s214_s15] sm:$0xff]  ;;  %v762_v5 = vmov 0.0   ;;  %vm763_vm1 = vmmov 0   ;;  %vm254_vm2 = vcmask 31744  }
  0x38   : > { %v243_v1 = vcombine.high %v911_v0, %v911_v0  ;;  %v246_v2 = vsel %vm245_vm0, %v911_v0, 0.0  ;;  %593 = vmatprep.subr.mxu0 %v762_v5  ;;  %450 = vmatprep.mubr.f32.mxu1 %v762_v5  ;;  %v252_v8 = vld [vmem:[%s991_s1] sm:$0x3]  ;;  %v764_v9 = vmov 0   ;;  %vm331_vm3 = vcmask 1024   ;;  %s590_s9 = sshll.u32 %s817_s22, 7 }
  0x39   : > { %595 = vmatprep.mubr.msk.f32.mxu0 %vm763_vm1, %v762_v5  ;;  %649 = vset.pattern.permute.xlu0 %v764_v9  ;;  %v253_v10 = vld [vmem:[%s992_s2] sm:$0x3]  ;;  %vm358_vm4 = vcmask 25600   ;;  %s240_s10 = scalar_lea.vmem [#allocation5], %s575_s17  ;;  %s946_s29 = scalar_lea.hbm %s995_s5, %s590_s9 }
  0x3a   : > { %v247_v3 = vsel %vm245_vm0, %v243_v1, 0.0  ;;  %579 = vmatprep.subr.msk.mxu1 %vm245_vm0, %v243_v1  ;;  %v366_v32 = vld [vmem:[%s994_s4] sm:$0x3]  ;;  %v469_v1 = vlaneseq  ;;  %s498_s11 = sshll.u32 %s240_s10, 4  ;;  %s484_s12 = scalar_lea.sflag [#allocation4], %s901_s13  ;;  %s948_s11 = int_to_ptr.vmem [resolvable:$true] %s498_s11 }
  0x3b   : > { %v248_v4 = vadd.f32 %v247_v3, %v246_v2  ;;  %580 = vmatpush1.msk.msra.mxu1 %vm245_vm0, %v911_v0  ;;  %v351_v36 = vld [vmem:[%s993_s3] sm:$0x3]  ;;  %s693_s14 = scalar_lea.vmem %s948_s11, 128  ;;  %p1004_p11 = scmp.ne.s32.totalorder %s999_s30, 0 }
  0x3c   : > { %v470_v2 = vshrl.u32 %v469_v1, 7  ;;  %p694_p6 = scmp.ne.s32.totalorder %s948_s11, %s693_s14  ;;  %s765_s22 = smov [#allocation5]  }
  0x3d   : > { %249 = vadd.xlane.f32.xlu0 %v248_v4  ;;  %s697_s17 = sshll.u32 %s765_s22, 4  ;;  %s698_s17 = int_to_ptr.vmem [resolvable:$false] %s697_s17 }
  0x3e   : > { %v471_v3 = vsub.s32 0, %v470_v2  ;;  %p695_p12 = pnand %p694_p6, %p1004_p11  ;;  %s699_s16 = scalar_lea.vmem %s698_s17, 256 }
  0x3f   : > { %p700_p7 = scmp.lt.s32.totalorder %s948_s11, %s698_s17  ;;  %p701_p10 = scmp.lt.s32.totalorder %s699_s16, %s693_s14 }
  0x40   : > { %p696_p13 = pneg %p695_p12 }
  0x41   : > { %p702_p2 = por %p701_p10, %p700_p7 }
  0x43   : > { %p703_p4 = pnand %p702_p2, %p696_p13 }
  0xca   : > { %v250_v6 = vpop.xlane.xlu0 %249 }
  0xcb   : > { %v251_v7 = vmul.f32 0.00390625, %v250_v6 }
  0xcd   : > { %594 = vmatpush3.msk.msra.mxu0 %vm245_vm0, %v251_v7 }
  0xce   : > { %596 = vmatmul.mubr.msk.f32.vlgmr.msra.gmra.mrb[0].mxu0 %vm254_vm2, %v252_v8 }
 0x1a1   : > { %v327_v11 = vpop.f32.mrb[0].mxu0 }
 0x1a2   : > { %v328_v12 = vadd.f32 %v327_v11, %v253_v10  ;;  %v597_v13 = vpop.f32.mrb[1].mxu0 }
 0x1a4   : > { %v332_v14 = vsel %vm331_vm3, %v328_v12, -inf }
 0x1a5   : > { %v333_v15 = vrot.slane %v332_v14, 4 }
 0x1a7   : > { %v334_v16 = vmax.f32 %v332_v14, %v333_v15 }
 0x1a9   : > { %v335_v17 = vrot.slane %v334_v16, 2 }
 0x1ab   : > { %v336_v18 = vmax.f32 %v334_v16, %v335_v17 }
 0x1ad   : > { %v337_v19 = vrot.slane %v336_v18, 1 }
 0x1af   : > { %v338_v20 = vmax.f32 %v336_v18, %v337_v19 }
 0x1b1   : > { %v339_v21 = vsub.f32 %v328_v12, %v338_v20 }
 0x1b3   : > { %v340_v22 = vmul.f32 1.442695, %v339_v21 }
 0x1b5   : > { %651 = vpow2.f32 %v340_v22 }
 0x1bf   : > { %v652_v23 = vpop.eup %651 }
 0x1c0   : > { %v342_v24 = vsel %vm331_vm3, %v652_v23, 0.0 }
 0x1c1   : > { %v343_v25 = vrot.slane %v342_v24, 4 }
 0x1c3   : > { %v344_v26 = vadd.f32 %v343_v25, %v342_v24 }
 0x1c5   : > { %v345_v27 = vrot.slane %v344_v26, 2 }
 0x1c7   : > { %v346_v28 = vadd.f32 %v345_v27, %v344_v26 }
 0x1c9   : > { %v347_v29 = vrot.slane %v346_v28, 1 }
 0x1cb   : > { %v348_v30 = vadd.f32 %v347_v29, %v346_v28 }
 0x1cd   : > { %653 = vrcp.f32 %v348_v30 }
 0x1d7   : > { %v654_v31 = vpop.eup %653 }
 0x1d8   : > { %v350_v33 = vmul.f32 %v654_v31, %v652_v23 }
 0x1da   : > { %354 = vperm.xlu0 %649, %v350_v33   ;;  %v367_v34 = vmul.f32 %v366_v32, %v350_v33 }
 0x1dc   : > { %v368_v35 = vsel %vm331_vm3, %v367_v34, 0.0 }
 0x1dd   : > { %369 = vadd.xlane.f32.xlu1 %v368_v35 }
 0x259   : > { %v355_v37 = vpop.permute.xlu0 %354 }
 0x25a   : > { %v357_v38 = vmul.f32 %v355_v37, %v351_v36 }
 0x25c   : > { %v359_v39 = vsel %vm358_vm4, %v357_v38, 0.0 }
 0x25d   : > { %v360_v40 = vrot.slane %v359_v39, 4 }
 0x25f   : > { %v361_v41 = vadd.f32 %v360_v40, %v359_v39 }
 0x261   : > { %v362_v42 = vrot.slane %v361_v41, 2 }
 0x263   : > { %v363_v43 = vadd.f32 %v362_v42, %v361_v41 }
 0x265   : > { %v364_v44 = vrot.slane %v363_v43, 1 }
 0x267   : > { %v365_v45 = vadd.f32 %v364_v44, %v363_v43 }
 0x269   : > { %581 = vmatmul.mubr.msk.f32.vlgmr.msra.gmra.mrb[0].mxu1 %vm254_vm2, %v365_v45 }
 0x26a   : > { %v370_v46 = vpop.xlane.xlu1 %369 }
 0x26b   : > { %v371_v47 = vrot.slane %v370_v46, 4 }
 0x26d   : > { %v372_v48 = vadd.f32 %v371_v47, %v370_v46 }
 0x26f   : > { %v373_v49 = vrot.slane %v372_v48, 2 }
 0x271   : > { %v374_v50 = vadd.f32 %v373_v49, %v372_v48 }
 0x273   : > { %v375_v51 = vrot.slane %v374_v50, 1 }
 0x275   : > { %v376_v52 = vadd.f32 %v375_v51, %v374_v50 }
 0x277   : > { %598 = vpush %v376_v52 }
 0x2a8   : > { %s599_s7 = spop %598 }
 0x2a9   : > { %v378_v53 = vstv %s599_s7 }
 0x33c   : > { %v452_v54 = vpop.f32.mrb[0].mxu1 }
 0x33d   : > { %v453_v55 = vadd.f32 %v452_v54, %v378_v53  ;;  %v454_v56 = vpop.f32.mrb[1].mxu1 }
 0x33e   : > { %v455_v57 = vadd.f32 %v454_v56, %v378_v53 }
 0x33f   : > { %v582_v58 = vmul.f32 -1.442695, %v453_v55 }
 0x340   : > { %v583_v59 = vmul.f32 -1.442695, %v455_v57 }
 0x341   : > { %655 = vpow2.f32 %v582_v58 }
 0x342   : > { %657 = vpow2.f32 %v583_v59 }
 0x34b   : > { %v656_v60 = vpop.eup %655 }
 0x34c   : > { %v658_v61 = vpop.eup %657  ;;  %v463_v62 = vadd.f32 1.0, %v656_v60 }
 0x34d   : > { %v464_v63 = vadd.f32 1.0, %v658_v61 }
 0x34e   : > { %659 = vrcp.f32 %v463_v62 }
 0x34f   : > { %661 = vrcp.f32 %v464_v63 }
 0x358   : > { %v660_v4 = vpop.eup %659 }
 0x359   : > { %v662_v5 = vpop.eup %661  ;;  %v472_v6 = vrot.slane %v660_v4, %v471_v3 }
 0x35a   : > { %v476_v7 = vrot.slane %v662_v5, %v471_v3 }
 0x35c   : > { %v479_v8 = vcombine.low %v472_v6, %v476_v7 }
 0x35e   : > { %v481_v9 = vmul.f32 %v479_v8, %v911_v0 }
 0x360   : > { %482 = vst [vmem:[%s240_s10] sm:$0xff] %v481_v9 }
 0x361   : > { %706 = shalt.err (!%p703_p4)
}
 0x362   : > { %s707_s13 = scalar_lea.hbm %s946_s29, 128  ;;  %s711_s28 = scalar_lea.hbm %s995_s5, 256 }
 0x363   : > { %p708_p5 = scmp.ne.s32.totalorder %s946_s29, %s707_s13  ;;  %p712_p0 = scmp.lt.u32.totalorder %s946_s29, %s995_s5 }
 0x364   : > { %p713_p1 = scmp.lt.u32.totalorder %s711_s28, %s707_s13  ;;  %p715_p6 = scmp.lt.u32.totalorder %s707_s13, %s946_s29 }
 0x365   : > { %p709_p8 = pnand %p708_p5, %p1004_p11 }
 0x366   : > { %p714_p3 = por %p713_p1, %p712_p0 }
 0x367   : > { %p710_p9 = pneg %p709_p8 }
 0x368   : > { %p716_p12 = por %p715_p6, %p714_p3 }
 0x36a   : > { %p717_p13 = pnand %p716_p12, %p710_p9 }
 0x36c   : > { %720 = shalt.err (!%p717_p13)
}
 0x36d   : > { %602 = dma.vmem_to_hbm [thread:$0]  (%p1004_p11), %s948_s11, 128, %s946_s29, %s484_s12  }
 0x36e PF: > { %s510_s9 = sand.u32 1, %s747_s18   ;;  %p1005_p7 = scmp.ne.s32.totalorder %s1000_s6, 0 }
 0x36f   : > { %p1006_p10 = scmp.ge.s32.totalorder %s759_s21, 2  ;;  %s511_s10 = scalar_lea.sflag [#allocation4], %s510_s9 }
 0x371   : > { %p609_p2 = pnand %p1006_p10, %p1005_p7 }
 0x373   : > { %742 = dma.done.wait (!%p609_p2), %s511_s10, 128  }
 0x374   : > { %744 = vsyncadd (!%p609_p2), %s511_s10, 4294967168  ;;  %p18_p4 = scmp.ge.s32.totalorder %s821_s24, 4   ;;  %s1007_s18 = smov %s751_s19 }
 0x375   : > { %s1008_s19 = smov %s755_s20  ;;  %s1009_s20 = smov %s833_s27 }
 0x376   : > { %s1010_s21 = smov %s821_s24  ;;  %20 = sbr.rel (!%p18_p4) target bundleno = 5 (0x5), region = 85 }
 0x37d   :  { %516 = vsyncpa [#allocation3], 1 }
 0x37e   :  { %518 = vsyncpa [#allocation3 + $0x1], 1 }
 0x37f   :  { %519 = vsyncpa [#allocation4], 1 }
 0x380   :  { %521 = vsyncpa [#allocation4 + $0x1], 1 }

</bundles_post_ra>
